<compile_context>
chip_gen: v7x
topology: tpu7x:2x2x1
jax: 0.10.0
libtpu: 0.0.40
codegen_flags: <defaults>
</compile_context>

<pallas_src>
import jax
import jax.numpy as jnp
from jax.experimental import pallas as pl
from jax.experimental.pallas import tpu as pltpu

_VMEM_CAP = 48 * 1024 * 1024                 # headroom below v7x's 64 MiB physical VMEM
_WEIGHT_RESIDENT_BUDGET = 24 * 1024 * 1024   # max bf16 weight slab kept fully resident


def mlp_kernel(x_ref, w_ref, b_ref, o_ref):
    # x_ref: [TB, H_in] (native dtype), w_ref: [H_in, TN] (compute dtype, e.g. bf16),
    # b_ref: [1, TN] (f32), o_ref: [TB, TN].
    x = x_ref[...].astype(w_ref.dtype)        # VPU cast; hidden under MXU/DMA
    acc = jnp.dot(x, w_ref[...], preferred_element_type=jnp.float32)   # MXU, f32 acc
    acc = acc + b_ref[...]                    # f32 bias, broadcasts over rows
    o_ref[...] = jnp.tanh(acc).astype(o_ref.dtype)   # f32 tanh epilogue (v5e-safe)


def prepare_mlp_params(weight, bias, compute_dtype=jnp.bfloat16):
    """One-time parameter setup (do NOT call per forward).

    weight: [H_out, H_in] (nn.Linear layout) -> [H_in, H_out] in compute_dtype.
    bias:   [H_out]                          -> [1, H_out] f32.
    Pass compute_dtype=jnp.float32 for a full-precision MXU path.
    """
    H_out, H_in = weight.shape
    assert bias.shape == (H_out,), "bias shape mismatch"
    w_t = jnp.asarray(weight).T.astype(compute_dtype)          # [H_in, H_out]
    b2d = jnp.asarray(bias).astype(jnp.float32).reshape(1, H_out)
    return w_t, b2d


def _round_up(x, m):
    return ((x + m - 1) // m) * m


def _pick_tb(B, block_b):
    if B > block_b:
        return block_b
    # Small batch: split into >=2 tiles (keeps both v7x TensorCores busy via the
    # "parallel" batch axis) while keeping tiles a multiple of 16 rows.
    if B >= 32:
        return _round_up(-(-B // 2), 16)
    return B


def mlp_layer(features, w_t, b2d, *, block_b=512, out_dtype=None):
    """features: [B, H_in]; w_t: [H_in, H_out] (from prepare_mlp_params); b2d: [1, H_out]."""
    B, H_in = features.shape
    H_in_w, H_out = w_t.shape
    assert H_in == H_in_w, "features / weight inner dims mismatch"
    assert b2d.shape == (1, H_out), "bias shape mismatch"
    out_dtype = features.dtype if out_dtype is None else out_dtype

    x_bytes = jnp.dtype(features.dtype).itemsize
    w_bytes = jnp.dtype(w_t.dtype).itemsize
    o_bytes = jnp.dtype(out_dtype).itemsize

    tb = _pick_tb(B, block_b)

    # Keep the weight fully resident if it fits the budget, else stream H_out tiles.
    weight_slab = H_in * H_out * w_bytes
    tile_n = (weight_slab > _WEIGHT_RESIDENT_BUDGET) and (H_out % 128 == 0)
    # TODO(synk): if H_out is not a 128-multiple AND the weight slab exceeds the
    # resident budget, add a K-tile axis with an f32 accumulator + pl.when init.
    if tile_n:
        tn = max(128, (_WEIGHT_RESIDENT_BUDGET // (2 * H_in * w_bytes)) // 128 * 128)
        tn = min(tn, H_out)
    else:
        tn = H_out

    def footprint(tb_):
        f = 2 * tb_ * H_in * x_bytes          # x tiles (double-buffered)
        f += 2 * tb_ * tn * o_bytes           # out tiles (double-buffered)
        f += (2 if tile_n else 1) * H_in * tn * w_bytes   # weight (1x if resident)
        f += 2 * tn * 4                       # bias (negligible)
        return f

    # Shrink the batch tile (never the lane-dense output width) until we fit with headroom.
    while footprint(tb) > _VMEM_CAP and tb > 8:
        tb = max(8, ((tb // 2) // 8) * 8)
    vmem_limit = min(_VMEM_CAP, int(footprint(tb) * 1.25) + (2 << 20))

    if tile_n:
        grid = (pl.cdiv(B, tb), pl.cdiv(H_out, tn))
        in_specs = [
            pl.BlockSpec((tb, H_in), lambda i, j: (i, 0)),    # x: tiled over batch
            pl.BlockSpec((H_in, tn), lambda i, j: (0, j)),    # weight: streamed over N
            pl.BlockSpec((1, tn), lambda i, j: (0, j)),       # bias: streamed over N
        ]
        out_spec = pl.BlockSpec((tb, tn), lambda i, j: (i, j))
        dim_sem = ("parallel", "parallel")                    # K whole -> no accumulation
    else:
        grid = (pl.cdiv(B, tb),)
        in_specs = [
            pl.BlockSpec((tb, H_in), lambda i: (i, 0)),       # x: tiled over batch
            pl.BlockSpec((H_in, H_out), lambda i: (0, 0),     # weight: resident,
                         pipeline_mode=pl.Buffered(1)),       #   single-buffered
            pl.BlockSpec((1, H_out), lambda i: (0, 0),
                         pipeline_mode=pl.Buffered(1)),       # bias: resident
        ]
        out_spec = pl.BlockSpec((tb, H_out), lambda i: (i, 0))
        dim_sem = ("parallel",)                               # v7x: shard batch across TCs

    return pl.pallas_call(
        mlp_kernel,
        out_shape=jax.ShapeDtypeStruct((B, H_out), out_dtype),
        grid_spec=pltpu.PrefetchScalarGridSpec(
            num_scalar_prefetch=0,
            grid=grid,
            in_specs=in_specs,
            out_specs=out_spec,
        ),
        compiler_params=pltpu.CompilerParams(
            dimension_semantics=dim_sem,
            vmem_limit_bytes=vmem_limit,
        ),
    )(features, w_t, b2d)


if __name__ == "__main__":
    key = jax.random.PRNGKey(0)
    k_x, k_w, k_b, k_x2 = jax.random.split(key, 4)

    # Small shapes consistent with the module: a handful of CLS vectors,
    # hidden=128 (lane-dense last dim; real pooler hiddens are 128-multiples).
    B, H = 8, 128
    features = jax.random.normal(k_x, (B, H), dtype=jnp.float32)
    bound = 1.0 / jnp.sqrt(jnp.float32(H))
    weight = jax.random.uniform(k_w, (H, H), dtype=jnp.float32,
                                minval=-bound, maxval=bound)   # nn.Linear [out, in]
    bias = jax.random.uniform(k_b, (H,), dtype=jnp.float32,
                              minval=-bound, maxval=bound)

    # One-time parameter prep (bf16 cast + transpose hoisted out of the per-call path).
    w_t, b2d = prepare_mlp_params(weight, bias)

    out = mlp_layer(features, w_t, b2d)
    jax.block_until_ready(out)
    assert out.shape == (B, H)

    # Tight check vs the same bf16-operand / f32-accumulation math.
    x_bf = features.astype(jnp.bfloat16).astype(jnp.float32)
    w_bf = weight.astype(jnp.bfloat16).astype(jnp.float32)
    ref_bf = jnp.tanh(x_bf @ w_bf.T + bias)
    assert jnp.allclose(out, ref_bf, atol=2e-3, rtol=2e-3)

    # Loose check vs the full-f32 PyTorch-style reference (bounds bf16 operand error).
    ref_f32 = jnp.tanh(features @ weight.T + bias)
    assert jnp.allclose(out, ref_f32, atol=2e-2, rtol=2e-2)

    # Second shape: exercises the small-batch 2-tile split (v7x megacore) and the
    # ragged (masked) last batch tile.
    B2 = 40
    features2 = jax.random.normal(k_x2, (B2, H), dtype=jnp.float32)
    out2 = mlp_layer(features2, w_t, b2d)
    jax.block_until_ready(out2)
    assert out2.shape == (B2, H)
    ref2 = jnp.tanh(features2 @ weight.T + bias)
    assert jnp.allclose(out2, ref2, atol=2e-2, rtol=2e-2)

    print("KERNEL_OK")
</pallas_src>

<mosaic_0001>
module attributes {stable_mosaic.version = 11 : i64} {
  func.func @mlp_kernel(%arg0: i32, %arg1: memref<8x128xf32, #tpu.memory_space<vmem>>, %arg2: memref<128x128xbf16, #tpu.memory_space<vmem>>, %arg3: memref<1x128xf32, #tpu.memory_space<vmem>>, %arg4: memref<8x128xf32, #tpu.memory_space<vmem>>) attributes {dimension_semantics = [#tpu.dimension_semantics<parallel>], iteration_bounds = array<i64: 1>, scalar_prefetch = 0 : i64, scratch_operands = 0 : i64, tpu.core_type = #tpu.core_type<tc>, window_params = [{transform_indices = @transform_0, window_bounds = array<i64: 8, 128>}, {pipeline_mode = #tpu.pipeline_mode<synchronous>, transform_indices = @transform_1, window_bounds = array<i64: 128, 128>}, {pipeline_mode = #tpu.pipeline_mode<synchronous>, transform_indices = @transform_2, window_bounds = array<i64: 1, 128>}, {transform_indices = @transform_3, window_bounds = array<i64: 8, 128>}]} {
    %c0 = arith.constant 0 : index
    %c0_0 = arith.constant 0 : index
    %0 = vector.load %arg1[%c0, %c0_0] : memref<8x128xf32, #tpu.memory_space<vmem>>, vector<8x128xf32>
    %1 = arith.truncf %0 : vector<8x128xf32> to vector<8x128xbf16>
    %c0_1 = arith.constant 0 : index
    %c0_2 = arith.constant 0 : index
    %2 = vector.load %arg2[%c0_1, %c0_2] : memref<128x128xbf16, #tpu.memory_space<vmem>>, vector<128x128xbf16>
    %cst = arith.constant dense<0.000000e+00> : vector<8x128xf32>
    %3 = tpu.matmul %1, %2, %cst {dimension_numbers = #tpu.dot_dimension_numbers<[1], [0], [0], [1], [0, 0, 1, 1], [], []>} : vector<8x128xbf16>, vector<128x128xbf16>, vector<8x128xf32> -> vector<8x128xf32>
    %c0_3 = arith.constant 0 : index
    %c0_4 = arith.constant 0 : index
    %4 = vector.load %arg3[%c0_3, %c0_4] : memref<1x128xf32, #tpu.memory_space<vmem>>, vector<1x128xf32>
    %5 = vector.broadcast %4 : vector<1x128xf32> to vector<8x128xf32>
    %6 = arith.addf %3, %5 : vector<8x128xf32>
    %7 = math.tanh %6 : vector<8x128xf32>
    %c0_5 = arith.constant 0 : index
    %c0_6 = arith.constant 0 : index
    %8 = vector.load %arg4[%c0_5, %c0_6] : memref<8x128xf32, #tpu.memory_space<vmem>>, vector<8x128xf32>
    tpu.vector_store %arg4[%c0_5, %c0_6], %7 {strides = array<i32>} : memref<8x128xf32, #tpu.memory_space<vmem>>, vector<8x128xf32>,
    return
  }
  func.func @transform_0(%arg0: i32) -> (i32, i32) {
    %c0_i32 = arith.constant 0 : i32
    %c0_i32_0 = arith.constant 0 : i32
    return %arg0, %c0_i32 : i32, i32
  }
  func.func @transform_1(%arg0: i32) -> (i32, i32) {
    %c0_i32 = arith.constant 0 : i32
    %c0_i32_0 = arith.constant 0 : i32
    %c0_i32_1 = arith.constant 0 : i32
    return %c0_i32, %c0_i32_0 : i32, i32
  }
  func.func @transform_2(%arg0: i32) -> (i32, i32) {
    %c0_i32 = arith.constant 0 : i32
    %c0_i32_0 = arith.constant 0 : i32
    %c0_i32_1 = arith.constant 0 : i32
    return %c0_i32, %c0_i32_0 : i32, i32
  }
  func.func @transform_3(%arg0: i32) -> (i32, i32) {
    %c0_i32 = arith.constant 0 : i32
    %c0_i32_0 = arith.constant 0 : i32
    return %arg0, %c0_i32 : i32, i32
  }
}

</mosaic_0001>

<bundles_post_ra>
// kernel: tpu_custom_call.1
= control target key start
LH: loop header
LB: loop body
LE: loop exit
PB: predicated region body
PF: predicated region fallthrough
CT: control target
= control target key end

     0   :  { %8 = vsyncpa [#allocation3], 0  ;;  %s373_s0 = inlined_call_operand.hbm [shape: f32[8,128], index: 0, kind: input, shape index: {}]   ;;  %s374_s1 = inlined_call_operand.hbm [shape: bf16[128,128], index: 1, kind: input, shape index: {}]   ;;  %s375_s2 = inlined_call_operand.vmem [shape: f32[1,128], index: 2, kind: input, shape index: {}]   ;;  %s376_s3 = inlined_call_operand.hbm [shape: f32[8,128], index: 3, kind: output, shape index: {}]  }
   0x1   :  { %9 = vsyncpa [#allocation6], 0 }
   0x2   :  { %10 = vsyncpa [#allocation4], 0  ;;  %s300_s12 = smov [#allocation2]   ;;  %s301_s14 = smov [#allocation5]  }
   0x3   :  { %s17_s13 = sshll.u32 %s300_s12, 4  ;;  %s26_s15 = sshll.u32 %s301_s14, 4  ;;  %s18_s13 = int_to_ptr.vmem [resolvable:$true] %s17_s13  ;;  %s327_s15 = int_to_ptr.vmem [resolvable:$true] %s26_s15 }
   0x4   :  { %s228_s18 = scalar_lea.hbm %s373_s0, 128 }
   0x5   :  { %p229_p0 = scmp.ne.s32.totalorder %s373_s0, %s228_s18  ;;  %p232_p1 = scmp.lt.u32.totalorder %s228_s18, %s373_s0 }
   0x7   :  { %p234_p2 = pnand %p232_p1, %p229_p0 }
   0x9   :  { %237 = shalt.err (!%p234_p2)
}
   0xa   :  { %s238_s23 = scalar_lea.vmem %s18_s13, 128  ;;  %p243_p4 = scmp.lt.s32.totalorder %s18_s13, %s18_s13 }
   0xb   :  { %p239_p3 = scmp.ne.s32.totalorder %s18_s13, %s238_s23  ;;  %p244_p5 = scmp.lt.s32.totalorder %s238_s23, %s238_s23 }
   0xd   :  { %p245_p6 = por %p244_p5, %p243_p4 }
   0xf   :  { %p246_p7 = pnand %p245_p6, %p239_p3 }
  0x11   :  { %249 = shalt.err (!%p246_p7)
}
  0x12   :  { %20 = dma.hbm_to_vmem [thread:$0]  %s373_s0, 128, %s18_s13, [#allocation3]  }
  0x13   :  { %s250_s28 = scalar_lea.hbm %s374_s1, 1024 }
  0x14   :  { %p251_p8 = scmp.ne.s32.totalorder %s374_s1, %s250_s28  ;;  %p254_p9 = scmp.lt.u32.totalorder %s250_s28, %s374_s1 }
  0x16   :  { %p256_p10 = pnand %p254_p9, %p251_p8 }
  0x18   :  { %259 = shalt.err (!%p256_p10)
}
  0x19   :  { %s260_s6 = scalar_lea.vmem %s327_s15, 1024  ;;  %p265_p12 = scmp.lt.s32.totalorder %s327_s15, %s327_s15 }
  0x1a   :  { %p261_p11 = scmp.ne.s32.totalorder %s327_s15, %s260_s6  ;;  %p266_p13 = scmp.lt.s32.totalorder %s260_s6, %s260_s6 }
  0x1c   :  { %p267_p0 = por %p266_p13, %p265_p12 }
  0x1e   :  { %p268_p1 = pnand %p267_p0, %p261_p11 }
  0x20   :  { %271 = shalt.err (!%p268_p1)
}
  0x21   :  { %s302_s0 = smov 64   ;;  %s303_s7 = smov 4  }
  0x22   :  { %32 = dma.hbm_to_vmem [thread:$0]  %s374_s1, 1024, %s327_s15, [#allocation6], %s302_s0, %s302_s0, %s303_s7  }
  0x23   :  { %294 = dma.done.wait [#allocation3], 128  }
  0x24   :  { %295 = vsyncadd [#allocation3], 4294967168 }
  0x25   :  { %296 = dma.done.wait [#allocation6], 1024  }
  0x26   :  { %297 = vsyncadd [#allocation6], 4294966272  ;;  %v304_v0 = vmov 0.0   ;;  %vm305_vm0 = vmmov 0   ;;  %v218_v1 = vld [vmem:[#allocation5] sm:$0xff]   ;;  %v219_v2 = vld [vmem:[#allocation5 + $0x8] sm:$0xff]  }
  0x27   :  { %191 = vmatprep.subr.bf16.mxu0 %v304_v0  ;;  %207 = vmatprep.mubr.msk.bf16.mxu0 %vm305_vm0, %v304_v0  ;;  %v220_v3 = vld [vmem:[#allocation5 + $0x10] sm:$0xff]   ;;  %v221_v4 = vld [vmem:[#allocation5 + $0x18] sm:$0xff]   ;;  %v222_v5 = vld [vmem:[#allocation5 + $0x20] sm:$0xff]   ;;  %s306_s11 = smov [#allocation7]  }
  0x28   :  { %192 = vmatpush3.bf16.msra.mxu0 %v218_v1  ;;  %v223_v6 = vld [vmem:[#allocation5 + $0x28] sm:$0xff]   ;;  %v224_v7 = vld [vmem:[#allocation5 + $0x30] sm:$0xff]   ;;  %v225_v8 = vld [vmem:[#allocation5 + $0x38] sm:$0xff]   ;;  %s163_s12 = sshll.u32 %s306_s11, 4  ;;  %s164_s12 = int_to_ptr.vmem [resolvable:$true] %s163_s12 }
  0x29   :  { %193 = vmatprep.subr.bf16.mxu0 %v304_v0  ;;  %v42_v9 = vld [vmem:[#allocation2] sm:$0xff]  ;;  %s272_s13 = scalar_lea.vmem %s164_s12, 128  ;;  %p277_p3 = scmp.lt.s32.totalorder %s164_s12, %s164_s12 }
  0x2a   :  { %v43_v10 = vpack.c.bf16 %v42_v9, %v42_v9  ;;  %v173_v11 = vld [vmem:[%s375_s2] ss:$0 sm:$0xff]  ;;  %p273_p2 = scmp.ne.s32.totalorder %s164_s12, %s272_s13  ;;  %p278_p4 = scmp.lt.s32.totalorder %s272_s13, %s272_s13 }
  0x2c   :  { %194 = vmatpush3.bf16.msra.mxu0 %v219_v2  ;;  %p279_p5 = por %p278_p4, %p277_p3 }
  0x2d   :  { %195 = vmatprep.subr.bf16.mxu0 %v304_v0 }
  0x2e   :  { %p280_p6 = pnand %p279_p5, %p273_p2 }
  0x30   :  { %196 = vmatpush3.bf16.msra.mxu0 %v220_v3 }
  0x31   :  { %197 = vmatprep.subr.bf16.mxu0 %v304_v0 }
  0x34   :  { %198 = vmatpush3.bf16.msra.mxu0 %v221_v4 }
  0x35   :  { %199 = vmatprep.subr.bf16.mxu0 %v304_v0 }
  0x38   :  { %200 = vmatpush3.bf16.msra.mxu0 %v222_v5 }
  0x39   :  { %201 = vmatprep.subr.bf16.mxu0 %v304_v0 }
  0x3c   :  { %202 = vmatpush3.bf16.msra.mxu0 %v223_v6 }
  0x3d   :  { %203 = vmatprep.subr.bf16.mxu0 %v304_v0 }
  0x40   :  { %204 = vmatpush3.bf16.msra.mxu0 %v224_v7 }
  0x41   :  { %205 = vmatprep.subr.bf16.mxu0 %v304_v0 }
  0x44   :  { %206 = vmatpush3.bf16.msra.mxu0 %v225_v8 }
  0x47   :  { %208 = vmatmul.mubr.bf16.vlgmr.msra.gmra.mrb[0].mxu0 %v43_v10 }
 0x11a   :  { %v149_v12 = vpop.f32.mrb[0].mxu0 }
 0x11b   :  { %v150_v13 = vadd.f32 %v173_v11, %v149_v12  ;;  %v209_v14 = vpop.f32.mrb[1].mxu0 }
 0x11c   :  { %v152_v15 = vpop.f32.mrb[2].mxu0 }
 0x11d   :  { %226 = vtanh.f32 %v150_v13  ;;  %v210_v16 = vpop.f32.mrb[3].mxu0 }
 0x127   :  { %v227_v17 = vpop.eup %226 }
 0x128   :  { %156 = vst [vmem:[#allocation7] sm:$0xff] %v227_v17 }
 0x129   :  { %283 = shalt.err (!%p280_p6)
}
 0x12a   :  { %s284_s15 = scalar_lea.hbm %s376_s3, 128 }
 0x12b   :  { %p285_p7 = scmp.ne.s32.totalorder %s376_s3, %s284_s15  ;;  %p288_p8 = scmp.lt.u32.totalorder %s284_s15, %s376_s3 }
 0x12d   :  { %p290_p9 = pnand %p288_p8, %p285_p7 }
 0x12f   :  { %293 = shalt.err (!%p290_p9)
}
 0x130   :  { %166 = dma.vmem_to_hbm [thread:$0]  %s164_s12, 128, %s376_s3, [#allocation4]  }
 0x131   :  { %298 = dma.done.wait [#allocation4], 128  }
 0x132   :  { %299 = vsyncadd [#allocation4], 4294967168 }
 0x133   :  { %170 = vsyncpa [#allocation3], 1 }
 0x134   :  { %171 = vsyncpa [#allocation6], 1 }
 0x135   :  { %172 = vsyncpa [#allocation4], 1 }

</bundles_post_ra>
